<compile_context>
chip_gen: v7x
topology: tpu7x:2x2x1
jax: 0.10.0
libtpu: 0.0.40
codegen_flags: <defaults>
</compile_context>

<pallas_src>
import functools

import jax
import jax.numpy as jnp
from jax.experimental import pallas as pl
from jax.experimental.pallas import tpu as pltpu

_LANE = 128        # lane width
_SUBLANE = 8       # f32 sublane height
_NEG_BIG = -1e30   # bias value for padded vocab columns (exp underflows to 0, stays finite)


def _round_up(x, m):
    return ((x + m - 1) // m) * m


# -----------------------------------------------------------------------------
# Kernel 1: GRUCell (PyTorch semantics, gate order r | z | n), one step.
#   r = sigmoid(W_ir x + b_ir + W_hr h + b_hr)
#   z = sigmoid(W_iz x + b_iz + W_hz h + b_hz)
#   n = tanh(W_in x + b_in + r * (W_hn h + b_hn))
#   h' = (1 - z) * n + z * h
# Hidden/input dims are padded to multiples of 128 so gate slices are lane-aligned.
# -----------------------------------------------------------------------------
def _gru_kernel(x_ref, h_ref, w_ih_ref, w_hh_ref, b_ih_ref, b_hh_ref,
                h_new_ref, *, hidden_pad):
    H = hidden_pad
    x = x_ref[...]                                  # (B_pad, K_pad) f32
    h = h_ref[...]                                  # (B_pad, H_pad) f32

    # bf16 MXU matmuls, f32 accumulation; biases + gate math in f32.
    gi = jnp.dot(x.astype(jnp.bfloat16), w_ih_ref[...],
                 preferred_element_type=jnp.float32) + b_ih_ref[...]
    gh = jnp.dot(h.astype(jnp.bfloat16), w_hh_ref[...],
                 preferred_element_type=jnp.float32) + b_hh_ref[...]

    # Lane-tile aligned gate slices (H is a multiple of 128).
    i_r, i_z, i_n = gi[:, 0:H], gi[:, H:2 * H], gi[:, 2 * H:3 * H]
    h_r, h_z, h_n = gh[:, 0:H], gh[:, H:2 * H], gh[:, 2 * H:3 * H]

    r = jax.nn.sigmoid(i_r + h_r)
    z = jax.nn.sigmoid(i_z + h_z)
    n = jnp.tanh(i_n + r * h_n)
    h_new_ref[...] = (1.0 - z) * n + z * h


# -----------------------------------------------------------------------------
# Kernel 2: output projection, tiled over the vocab dimension.
# Each grid step computes one (B_pad, TILE_V) logits tile plus its partial
# logsumexp (broadcast over 128 lanes so the partial-lse output stays lane-dense).
# No cross-tile state -> the grid axis is truly parallel (v7x megacore friendly).
# -----------------------------------------------------------------------------
def _project_kernel(h_ref, w_out_ref, b_out_ref, logits_ref, plse_ref):
    h16 = h_ref[...].astype(jnp.bfloat16)
    logits = jnp.dot(h16, w_out_ref[...],
                     preferred_element_type=jnp.float32) + b_out_ref[...]
    m = jnp.max(logits, axis=-1, keepdims=True)
    s = jnp.sum(jnp.exp(logits - m), axis=-1, keepdims=True)
    logits_ref[...] = logits
    plse_ref[...] = jnp.broadcast_to(m + jnp.log(s), plse_ref.shape)


# -----------------------------------------------------------------------------
# Kernel 3: log-softmax normalization, tiled over the vocab dimension.
# Each per-tile partial lse is replicated over 128 lanes, hence the log(128)
# correction when combining.
# -----------------------------------------------------------------------------
def _normalize_kernel(logits_ref, plse_ref, out_ref):
    p = plse_ref[...]                               # (B_pad, n_tiles*128)
    gm = jnp.max(p, axis=-1, keepdims=True)
    gs = jnp.sum(jnp.exp(p - gm), axis=-1, keepdims=True)
    lse = gm + jnp.log(gs) - jnp.log(128.0)         # global logsumexp per row
    out_ref[...] = logits_ref[...] - lse


# -----------------------------------------------------------------------------
# Parameter handling
# -----------------------------------------------------------------------------
def init_params(key, num_embeddings, embedding_dim, hidden_size, context_size=None):
    """PyTorch-layout f32 parameters (same layout as the nn.Module)."""
    input_size = embedding_dim + (context_size if context_size is not None else 0)
    keys = jax.random.split(key, 7)
    scale = 0.1
    return {
        "embedding": scale * jax.random.normal(keys[0], (num_embeddings, embedding_dim), jnp.float32),
        "gru_w_ih": scale * jax.random.normal(keys[1], (3 * hidden_size, input_size), jnp.float32),
        "gru_w_hh": scale * jax.random.normal(keys[2], (3 * hidden_size, hidden_size), jnp.float32),
        "gru_b_ih": scale * jax.random.normal(keys[3], (3 * hidden_size,), jnp.float32),
        "gru_b_hh": scale * jax.random.normal(keys[4], (3 * hidden_size,), jnp.float32),
        "out_w": scale * jax.random.normal(keys[5], (num_embeddings, hidden_size), jnp.float32),
        "out_b": scale * jax.random.normal(keys[6], (num_embeddings,), jnp.float32),
    }


def prepare_params(params, *, hidden_size, context_size=None, tile_v=2048):
    """One-time transform into kernel layout: pre-transposed, per-gate lane-padded,
    bf16 matmul operands. Done once, NOT per decode step."""
    emb = params["embedding"]
    V, E = emb.shape
    H = hidden_size
    K = E + (context_size if context_size is not None else 0)

    H_pad = _round_up(H, _LANE)
    K_pad = _round_up(K, _LANE)
    tile_v = min(tile_v, _round_up(V, _LANE))       # multiple of 128
    V_pad = _round_up(V, tile_v)

    def pad_gru_w(w, rows, rows_pad):
        # PyTorch (3H, rows) -> (rows_pad, 3*H_pad), each gate lane-padded separately.
        wt = w.T
        gates = [wt[:, g * H:(g + 1) * H] for g in range(3)]
        gates = [jnp.pad(g, ((0, rows_pad - rows), (0, H_pad - H))) for g in gates]
        return jnp.concatenate(gates, axis=1).astype(jnp.bfloat16)

    def pad_gru_b(b):
        gates = [b[g * H:(g + 1) * H] for g in range(3)]
        gates = [jnp.pad(g, (0, H_pad - H)) for g in gates]
        return jnp.concatenate(gates).reshape(1, 3 * H_pad).astype(jnp.float32)

    w_out = jnp.pad(params["out_w"].T, ((0, H_pad - H), (0, V_pad - V))).astype(jnp.bfloat16)
    b_out = jnp.pad(params["out_b"], (0, V_pad - V),
                    constant_values=_NEG_BIG).reshape(1, V_pad).astype(jnp.float32)

    return {
        "embedding": emb.astype(jnp.float32),
        "w_ih": pad_gru_w(params["gru_w_ih"], K, K_pad),
        "w_hh": pad_gru_w(params["gru_w_hh"], H, H_pad),
        "b_ih": pad_gru_b(params["gru_b_ih"]),
        "b_hh": pad_gru_b(params["gru_b_hh"]),
        "w_out": w_out,
        "b_out": b_out,
        "dims": dict(V=V, E=E, H=H, K=K, H_pad=H_pad, K_pad=K_pad,
                     V_pad=V_pad, tile_v=tile_v),
    }


# -----------------------------------------------------------------------------
# Forward
# -----------------------------------------------------------------------------
def decoder_gru_forward(token_ids, hidden, prepared, context=None):
    """One DecoderGRU step. token_ids: (B,) int32, hidden: (B, H)."""
    d = prepared["dims"]
    V, H, K = d["V"], d["H"], d["K"]
    H_pad, K_pad, V_pad, tile_v = d["H_pad"], d["K_pad"], d["V_pad"], d["tile_v"]

    # Embedding gather + optional context concat (plain-JAX glue; only B rows).
    embedded = jnp.take(prepared["embedding"], token_ids, axis=0)            # (B, E)
    x = embedded if context is None else jnp.concatenate([embedded, context], axis=-1)

    B = x.shape[0]
    B_pad = _round_up(max(B, _SUBLANE), _SUBLANE)   # full f32 sublane rows

    x_pad = jnp.zeros((B_pad, K_pad), jnp.float32).at[:B, :K].set(x)
    h_pad = jnp.zeros((B_pad, H_pad), jnp.float32).at[:B, :H].set(hidden)

    vmem = pl.BlockSpec(memory_space=pltpu.MemorySpace.VMEM)
    vmem_limit = 48 * 1024 * 1024                   # safe on v5e/v6e (128 MiB) and v7x (64 MiB/TC)

    # ---- Kernel 1: GRU cell ------------------------------------------------
    h_new_pad = pl.pallas_call(
        functools.partial(_gru_kernel, hidden_pad=H_pad),
        out_shape=jax.ShapeDtypeStruct((B_pad, H_pad), jnp.float32),
        in_specs=[vmem] * 6,
        out_specs=vmem,
        compiler_params=pltpu.CompilerParams(vmem_limit_bytes=vmem_limit),
    )(x_pad, h_pad, prepared["w_ih"], prepared["w_hh"],
      prepared["b_ih"], prepared["b_hh"])

    # ---- Kernel 2: tiled vocab projection + per-tile partial logsumexp -----
    n_tiles = V_pad // tile_v
    flops = 2 * B_pad * H_pad * V_pad
    bytes_acc = (H_pad * V_pad * 2                  # w_out (bf16) — dominant
                 + V_pad * 4                        # b_out
                 + B_pad * V_pad * 4                # logits write
                 + B_pad * H_pad * 4                # h_new
                 + B_pad * n_tiles * _LANE * 4)     # partial lse

    logits_pad, plse = pl.pallas_call(
        _project_kernel,
        grid=(n_tiles,),
        out_shape=(
            jax.ShapeDtypeStruct((B_pad, V_pad), jnp.float32),
            jax.ShapeDtypeStruct((B_pad, n_tiles * _LANE), jnp.float32),
        ),
        in_specs=[
            pl.BlockSpec((B_pad, H_pad), lambda j: (0, 0)),     # h_new (resident)
            pl.BlockSpec((H_pad, tile_v), lambda j: (0, j)),    # w_out tile (double-buffered)
            pl.BlockSpec((1, tile_v), lambda j: (0, j)),        # b_out tile
        ],
        out_specs=(
            pl.BlockSpec((B_pad, tile_v), lambda j: (0, j)),    # logits tile
            pl.BlockSpec((B_pad, _LANE), lambda j: (0, j)),     # partial lse (lane-dense)
        ),
        compiler_params=pltpu.CompilerParams(
            dimension_semantics=("parallel",),
            vmem_limit_bytes=vmem_limit),
        cost_estimate=pl.CostEstimate(flops=flops,
                                      transcendentals=B_pad * V_pad,
                                      bytes_accessed=bytes_acc),
    )(h_new_pad, prepared["w_out"], prepared["b_out"])

    # ---- Kernel 3: combine partial logsumexps, normalize to log-probs ------
    log_probs_pad = pl.pallas_call(
        _normalize_kernel,
        grid=(n_tiles,),
        out_shape=jax.ShapeDtypeStruct((B_pad, V_pad), jnp.float32),
        in_specs=[
            pl.BlockSpec((B_pad, tile_v), lambda j: (0, j)),
            pl.BlockSpec((B_pad, n_tiles * _LANE), lambda j: (0, 0)),
        ],
        out_specs=pl.BlockSpec((B_pad, tile_v), lambda j: (0, j)),
        compiler_params=pltpu.CompilerParams(
            dimension_semantics=("parallel",),
            vmem_limit_bytes=vmem_limit),
    )(logits_pad, plse)

    return log_probs_pad[:B, :V], h_new_pad[:B, :H]


# -----------------------------------------------------------------------------
# Pure-JAX reference (f32, PyTorch layout) for a sanity check.
# -----------------------------------------------------------------------------
def reference_forward(token_ids, hidden, raw_params, context=None):
    emb = jnp.take(raw_params["embedding"], token_ids, axis=0)
    x = emb if context is None else jnp.concatenate([emb, context], axis=-1)
    gi = x @ raw_params["gru_w_ih"].T + raw_params["gru_b_ih"]
    gh = hidden @ raw_params["gru_w_hh"].T + raw_params["gru_b_hh"]
    i_r, i_z, i_n = jnp.split(gi, 3, axis=-1)
    h_r, h_z, h_n = jnp.split(gh, 3, axis=-1)
    r = jax.nn.sigmoid(i_r + h_r)
    z = jax.nn.sigmoid(i_z + h_z)
    n = jnp.tanh(i_n + r * h_n)
    h_new = (1.0 - z) * n + z * hidden
    logits = h_new @ raw_params["out_w"].T + raw_params["out_b"]
    return jax.nn.log_softmax(logits, axis=-1), h_new


if __name__ == "__main__":
    # Small, deterministic problem sizes.
    B = 2       # batch (original module used 1)
    V = 256     # num_embeddings (vocab)
    E = 32      # embedding_dim
    H = 32      # hidden_size
    C = 16      # context_size

    key = jax.random.PRNGKey(0)
    k_params, k_tok, k_hid, k_ctx = jax.random.split(key, 4)

    raw_params = init_params(k_params, num_embeddings=V, embedding_dim=E,
                             hidden_size=H, context_size=C)
    prepared = prepare_params(raw_params, hidden_size=H, context_size=C)

    token_ids = jax.random.randint(k_tok, (B,), 0, V, dtype=jnp.int32)
    hidden0 = jax.random.normal(k_hid, (B, H), jnp.float32)
    context = jax.random.normal(k_ctx, (B, C), jnp.float32)

    log_probs, hidden1 = decoder_gru_forward(token_ids, hidden0, prepared, context=context)
    jax.block_until_ready((log_probs, hidden1))

    assert log_probs.shape == (B, V)
    assert hidden1.shape == (B, H)
    assert bool(jnp.all(jnp.isfinite(log_probs)))
    assert bool(jnp.all(jnp.isfinite(hidden1)))

    # Log-softmax rows must sum (in prob space) to ~1.
    probs_sum = jnp.sum(jnp.exp(log_probs), axis=-1)
    assert bool(jnp.all(jnp.abs(probs_sum - 1.0) < 1e-3))

    # Compare against the f32 pure-JAX reference (bf16 matmul weights -> loose tol).
    ref_lp, ref_h = reference_forward(token_ids, hidden0, raw_params, context=context)
    assert bool(jnp.allclose(log_probs, ref_lp, atol=5e-2))
    assert bool(jnp.allclose(hidden1, ref_h, atol=5e-2))

    print("KERNEL_OK")
</pallas_src>

<mosaic_0001>
module attributes {stable_mosaic.version = 11 : i64} {
  func.func @_gru_kernel(%arg0: memref<8x128xf32, #tpu.memory_space<vmem>>, %arg1: memref<8x128xf32, #tpu.memory_space<vmem>>, %arg2: memref<128x384xbf16, #tpu.memory_space<vmem>>, %arg3: memref<128x384xbf16, #tpu.memory_space<vmem>>, %arg4: memref<1x384xf32, #tpu.memory_space<vmem>>, %arg5: memref<1x384xf32, #tpu.memory_space<vmem>>, %arg6: memref<8x128xf32, #tpu.memory_space<vmem>>) attributes {dimension_semantics = [], scalar_prefetch = 0 : i64, scratch_operands = 0 : i64, tpu.core_type = #tpu.core_type<tc>} {
    %c0 = arith.constant 0 : index
    %c0_0 = arith.constant 0 : index
    %0 = vector.load %arg0[%c0, %c0_0] : memref<8x128xf32, #tpu.memory_space<vmem>>, vector<8x128xf32>
    %c0_1 = arith.constant 0 : index
    %c0_2 = arith.constant 0 : index
    %1 = vector.load %arg1[%c0_1, %c0_2] : memref<8x128xf32, #tpu.memory_space<vmem>>, vector<8x128xf32>
    %2 = arith.truncf %0 : vector<8x128xf32> to vector<8x128xbf16>
    %c0_3 = arith.constant 0 : index
    %c0_4 = arith.constant 0 : index
    %3 = vector.load %arg2[%c0_3, %c0_4] : memref<128x384xbf16, #tpu.memory_space<vmem>>, vector<128x384xbf16>
    %cst = arith.constant dense<0.000000e+00> : vector<8x384xf32>
    %4 = tpu.matmul %2, %3, %cst {dimension_numbers = #tpu.dot_dimension_numbers<[1], [0], [0], [1], [0, 0, 1, 1], [], []>} : vector<8x128xbf16>, vector<128x384xbf16>, vector<8x384xf32> -> vector<8x384xf32>
    %c0_5 = arith.constant 0 : index
    %c0_6 = arith.constant 0 : index
    %5 = vector.load %arg4[%c0_5, %c0_6] : memref<1x384xf32, #tpu.memory_space<vmem>>, vector<1x384xf32>
    %6 = vector.broadcast %5 : vector<1x384xf32> to vector<8x384xf32>
    %7 = arith.addf %4, %6 : vector<8x384xf32>
    %8 = arith.truncf %1 : vector<8x128xf32> to vector<8x128xbf16>
    %c0_7 = arith.constant 0 : index
    %c0_8 = arith.constant 0 : index
    %9 = vector.load %arg3[%c0_7, %c0_8] : memref<128x384xbf16, #tpu.memory_space<vmem>>, vector<128x384xbf16>
    %cst_9 = arith.constant dense<0.000000e+00> : vector<8x384xf32>
    %10 = tpu.matmul %8, %9, %cst_9 {dimension_numbers = #tpu.dot_dimension_numbers<[1], [0], [0], [1], [0, 0, 1, 1], [], []>} : vector<8x128xbf16>, vector<128x384xbf16>, vector<8x384xf32> -> vector<8x384xf32>
    %c0_10 = arith.constant 0 : index
    %c0_11 = arith.constant 0 : index
    %11 = vector.load %arg5[%c0_10, %c0_11] : memref<1x384xf32, #tpu.memory_space<vmem>>, vector<1x384xf32>
    %12 = vector.broadcast %11 : vector<1x384xf32> to vector<8x384xf32>
    %13 = arith.addf %10, %12 : vector<8x384xf32>
    %14 = vector.extract_strided_slice %7 {offsets = [0, 0], sizes = [8, 128], strides = [1, 1]} : vector<8x384xf32> to vector<8x128xf32>
    %15 = vector.extract_strided_slice %7 {offsets = [0, 128], sizes = [8, 128], strides = [1, 1]} : vector<8x384xf32> to vector<8x128xf32>
    %16 = vector.extract_strided_slice %7 {offsets = [0, 256], sizes = [8, 128], strides = [1, 1]} : vector<8x384xf32> to vector<8x128xf32>
    %17 = vector.extract_strided_slice %13 {offsets = [0, 0], sizes = [8, 128], strides = [1, 1]} : vector<8x384xf32> to vector<8x128xf32>
    %18 = vector.extract_strided_slice %13 {offsets = [0, 128], sizes = [8, 128], strides = [1, 1]} : vector<8x384xf32> to vector<8x128xf32>
    %19 = vector.extract_strided_slice %13 {offsets = [0, 256], sizes = [8, 128], strides = [1, 1]} : vector<8x384xf32> to vector<8x128xf32>
    %20 = arith.addf %14, %17 : vector<8x128xf32>
    %21 = arith.negf %20 : vector<8x128xf32>
    %22 = math.exp %21 : vector<8x128xf32>
    %cst_12 = arith.constant 1.000000e+00 : f32
    %23 = vector.broadcast %cst_12 : f32 to vector<8x128xf32>
    %24 = arith.addf %23, %22 : vector<8x128xf32>
    %25 = arith.divf %23, %24 : vector<8x128xf32>
    %26 = arith.addf %15, %18 : vector<8x128xf32>
    %27 = arith.negf %26 : vector<8x128xf32>
    %28 = math.exp %27 : vector<8x128xf32>
    %cst_13 = arith.constant 1.000000e+00 : f32
    %29 = vector.broadcast %cst_13 : f32 to vector<8x128xf32>
    %30 = arith.addf %29, %28 : vector<8x128xf32>
    %31 = arith.divf %29, %30 : vector<8x128xf32>
    %32 = arith.mulf %25, %19 : vector<8x128xf32>
    %33 = arith.addf %16, %32 : vector<8x128xf32>
    %34 = math.tanh %33 : vector<8x128xf32>
    %cst_14 = arith.constant 1.000000e+00 : f32
    %35 = vector.broadcast %cst_14 : f32 to vector<8x128xf32>
    %36 = arith.subf %35, %31 : vector<8x128xf32>
    %37 = arith.mulf %36, %34 : vector<8x128xf32>
    %38 = arith.mulf %31, %1 : vector<8x128xf32>
    %39 = arith.addf %37, %38 : vector<8x128xf32>
    %c0_15 = arith.constant 0 : index
    %c0_16 = arith.constant 0 : index
    %40 = vector.load %arg6[%c0_15, %c0_16] : memref<8x128xf32, #tpu.memory_space<vmem>>, vector<8x128xf32>
    tpu.vector_store %arg6[%c0_15, %c0_16], %39 {strides = array<i32>} : memref<8x128xf32, #tpu.memory_space<vmem>>, vector<8x128xf32>,
    return
  }
}

</mosaic_0001>

<bundles_post_ra>
// kernel: tpu_custom_call.1
= control target key start
LH: loop header
LB: loop body
LE: loop exit
PB: predicated region body
PF: predicated region fallthrough
CT: control target
= control target key end

     0   :  { %11 = vsyncpa [#allocation3], 0  ;;  %s1091_s0 = inlined_call_operand.hbm [shape: f32[8,128], index: 0, kind: input, shape index: {}]   ;;  %s1092_s1 = inlined_call_operand.hbm [shape: f32[8,128], index: 1, kind: input, shape index: {}]   ;;  %s1093_s2 = inlined_call_operand.hbm [shape: bf16[128,384], index: 2, kind: input, shape index: {}]   ;;  %s1094_s3 = inlined_call_operand.hbm [shape: bf16[128,384], index: 3, kind: input, shape index: {}]   ;;  %s1095_s4 = inlined_call_operand.vmem [shape: f32[1,384], index: 4, kind: input, shape index: {}]   ;;  %s1096_s5 = inlined_call_operand.vmem [shape: f32[1,384], index: 5, kind: input, shape index: {}]   ;;  %s1097_s6 = inlined_call_operand.hbm [shape: f32[8,128], index: 6, kind: output, shape index: {}]  }
   0x1   :  { %12 = vsyncpa [#allocation6], 0 }
   0x2   :  { %13 = vsyncpa [#allocation9], 0 }
   0x3   :  { %14 = vsyncpa [#allocation4], 0  ;;  %s953_s21 = smov [#allocation5]   ;;  %s954_s23 = smov [#allocation2]  }
   0x4   :  { %s31_s22 = sshll.u32 %s953_s21, 4  ;;  %s21_s24 = sshll.u32 %s954_s23, 4  ;;  %s32_s22 = int_to_ptr.vmem [resolvable:$true] %s31_s22  ;;  %s22_s24 = int_to_ptr.vmem [resolvable:$true] %s21_s24 }
   0x5   :  { %s835_s27 = scalar_lea.hbm %s1092_s1, 128 }
   0x6   :  { %p836_p0 = scmp.ne.s32.totalorder %s1092_s1, %s835_s27  ;;  %p839_p1 = scmp.lt.u32.totalorder %s835_s27, %s1092_s1 }
   0x8   :  { %p841_p2 = pnand %p839_p1, %p836_p0 }
   0xa   :  { %844 = shalt.err (!%p841_p2)
}
   0xb   :  { %s845_s8 = scalar_lea.vmem %s32_s22, 128  ;;  %p850_p4 = scmp.lt.s32.totalorder %s32_s22, %s32_s22 }
   0xc   :  { %p846_p3 = scmp.ne.s32.totalorder %s32_s22, %s845_s8  ;;  %p851_p5 = scmp.lt.s32.totalorder %s845_s8, %s845_s8 }
   0xe   :  { %p852_p6 = por %p851_p5, %p850_p4 }
  0x10   :  { %p853_p7 = pnand %p852_p6, %p846_p3 }
  0x12   :  { %856 = shalt.err (!%p853_p7)
}
  0x13   :  { %34 = dma.hbm_to_vmem [thread:$0]  %s1092_s1, 128, %s32_s22, [#allocation6]  }
  0x14   :  { %s857_s13 = scalar_lea.hbm %s1091_s0, 128 }
  0x15   :  { %p858_p8 = scmp.ne.s32.totalorder %s1091_s0, %s857_s13  ;;  %p861_p9 = scmp.lt.u32.totalorder %s857_s13, %s1091_s0 }
  0x17   :  { %p863_p10 = pnand %p861_p9, %p858_p8 }
  0x19   :  { %866 = shalt.err (!%p863_p10)
}
  0x1a   :  { %s867_s18 = scalar_lea.vmem %s22_s24, 128  ;;  %p872_p12 = scmp.lt.s32.totalorder %s22_s24, %s22_s24 }
  0x1b   :  { %p868_p11 = scmp.ne.s32.totalorder %s22_s24, %s867_s18  ;;  %p873_p13 = scmp.lt.s32.totalorder %s867_s18, %s867_s18 }
  0x1d   :  { %p874_p0 = por %p873_p13, %p872_p12 }
  0x1f   :  { %p875_p1 = pnand %p874_p0, %p868_p11 }
  0x21   :  { %878 = shalt.err (!%p875_p1)
}
  0x22   :  { %24 = dma.hbm_to_vmem [thread:$0]  %s1091_s0, 128, %s22_s24, [#allocation3]  }
  0x23   :  { %s955_s20 = smov [#allocation7]   ;;  %s879_s25 = scalar_lea.hbm %s1093_s2, 3072 }
  0x24   :  { %s40_s21 = sshll.u32 %s955_s20, 4  ;;  %p880_p2 = scmp.ne.s32.totalorder %s1093_s2, %s879_s25  ;;  %s41_s21 = int_to_ptr.vmem [resolvable:$true] %s40_s21 }
  0x25   :  { %p883_p3 = scmp.lt.u32.totalorder %s879_s25, %s1093_s2 }
  0x27   :  { %p885_p4 = pnand %p883_p3, %p880_p2 }
  0x29   :  { %888 = shalt.err (!%p885_p4)
}
  0x2a   :  { %s889_s30 = scalar_lea.vmem %s41_s21, 3072  ;;  %p894_p6 = scmp.lt.s32.totalorder %s41_s21, %s41_s21 }
  0x2b   :  { %p890_p5 = scmp.ne.s32.totalorder %s41_s21, %s889_s30  ;;  %p895_p7 = scmp.lt.s32.totalorder %s889_s30, %s889_s30 }
  0x2d   :  { %p896_p8 = por %p895_p7, %p894_p6 }
  0x2f   :  { %p897_p9 = pnand %p896_p8, %p890_p5 }
  0x31   :  { %900 = shalt.err (!%p897_p9)
}
  0x32   :  { %s956_s0 = smov 192   ;;  %s957_s24 = smov 12  }
  0x33   :  { %46 = dma.hbm_to_vmem [thread:$0]  %s1093_s2, 3072, %s41_s21, [#allocation6], %s956_s0, %s956_s0, %s957_s24  }
  0x34   :  { %s958_s9 = smov [#allocation8]   ;;  %s901_s13 = scalar_lea.hbm %s1094_s3, 3072 }
  0x35   :  { %s52_s10 = sshll.u32 %s958_s9, 4  ;;  %p902_p10 = scmp.ne.s32.totalorder %s1094_s3, %s901_s13  ;;  %s53_s10 = int_to_ptr.vmem [resolvable:$true] %s52_s10 }
  0x36   :  { %p905_p11 = scmp.lt.u32.totalorder %s901_s13, %s1094_s3 }
  0x38   :  { %p907_p12 = pnand %p905_p11, %p902_p10 }
  0x3a   :  { %910 = shalt.err (!%p907_p12)
}
  0x3b   :  { %s911_s18 = scalar_lea.vmem %s53_s10, 3072  ;;  %p916_p0 = scmp.lt.s32.totalorder %s53_s10, %s53_s10 }
  0x3c   :  { %p912_p13 = scmp.ne.s32.totalorder %s53_s10, %s911_s18  ;;  %p917_p1 = scmp.lt.s32.totalorder %s911_s18, %s911_s18 }
  0x3e   :  { %p918_p2 = por %p917_p1, %p916_p0 }
  0x40   :  { %p919_p3 = pnand %p918_p2, %p912_p13 }
  0x42   :  { %922 = shalt.err (!%p919_p3)
}
  0x43   :  { %58 = dma.hbm_to_vmem [thread:$0]  %s1094_s3, 3072, %s53_s10, [#allocation9], %s956_s0, %s956_s0, %s957_s24  }
  0x44   :  { %945 = dma.done.wait [#allocation3], 128  }
  0x45   :  { %946 = vsyncadd [#allocation3], 4294967168 }
  0x46   :  { %947 = dma.done.wait [#allocation6], 3200  }
  0x47   :  { %948 = vsyncadd [#allocation6], 4294964096 }
  0x48   :  { %949 = dma.done.wait [#allocation9], 3072  }
  0x49   :  { %950 = vsyncadd [#allocation9], 4294964224  ;;  %v959_v0 = vmov 0.0   ;;  %v960_v1 = vmov 0   ;;  %vm961_vm0 = vmmov 0   ;;  %v76_v23 = vld [vmem:[#allocation2] sm:$0xff]  ;;  %v113_v58 = vlaneseq }
  0x4a   :  { %703 = vmatprep.subr.bf16.mxu1 %v959_v0  ;;  %288 = vmatprep.mubr.bf16.mxu0 %v960_v1  ;;  %v761_v2 = vld [vmem:[#allocation7 + $0x4] ss:$12 sps:$4 sm:$0xff]   ;;  %v763_v3 = vld [vmem:[#allocation7] ss:$12 sps:$4 sm:$0xff]   ;;  %v764_v4 = vld [vmem:[#allocation7 + $0x1c] ss:$12 sps:$4 sm:$0xff]   ;;  %v78_v26 = vpack.c.bf16 %v76_v23, %v76_v23 }
  0x4b   :  { %719 = vmatprep.mubr.msk.bf16.mxu1 %vm961_vm0, %v959_v0  ;;  %256 = vmatprep.subr.bf16.mxu0 %v761_v2  ;;  %v766_v5 = vld [vmem:[#allocation7 + $0x18] ss:$12 sps:$4 sm:$0xff]   ;;  %v767_v6 = vld [vmem:[#allocation7 + $0x34] ss:$12 sps:$4 sm:$0xff]   ;;  %v769_v7 = vld [vmem:[#allocation7 + $0x30] ss:$12 sps:$4 sm:$0xff]  }
  0x4c   :  { %257 = vmatpush1.bf16.msra.mxu0 %v763_v3  ;;  %v770_v8 = vld [vmem:[#allocation7 + $0x4c] ss:$12 sps:$4 sm:$0xff]   ;;  %v781_v9 = vld [vmem:[#allocation7 + $0x8] ss:$12 sps:$4 sm:$0xff]   ;;  %v773_v11 = vld [vmem:[#allocation7 + $0x64] ss:$12 sps:$4 sm:$0xff]  }
  0x4d   :  { %258 = vmatprep.subr.bf16.mxu0 %v764_v4  ;;  %v772_v10 = vld [vmem:[#allocation7 + $0x48] ss:$12 sps:$4 sm:$0xff]   ;;  %704 = vmatpush3.bf16.msra.mxu1 %v781_v9  ;;  %v785_v12 = vld [vmem:[#allocation7 + $0x20] ss:$12 sps:$4 sm:$0xff]   ;;  %v787_v14 = vld [vmem:[#allocation7 + $0x38] ss:$12 sps:$4 sm:$0xff]  }
  0x4e   :  { %705 = vmatprep.subr.bf16.mxu1 %v959_v0  ;;  %v775_v13 = vld [vmem:[#allocation7 + $0x60] ss:$12 sps:$4 sm:$0xff]   ;;  %v776_v15 = vld [vmem:[#allocation7 + $0x7c] ss:$12 sps:$4 sm:$0xff]   ;;  %v778_v16 = vld [vmem:[#allocation7 + $0x78] ss:$12 sps:$4 sm:$0xff]  }
  0x4f   :  { %v791_v17 = vld [vmem:[#allocation7 + $0x50] ss:$12 sps:$4 sm:$0xff]   ;;  %v779_v18 = vld [vmem:[#allocation7 + $0x94] ss:$12 sps:$4 sm:$0xff]   ;;  %v783_v21 = vld [vmem:[#allocation7 + $0xac] ss:$12 sps:$4 sm:$0xff]  }
  0x50   :  { %259 = vmatpush1.bf16.msra.mxu0 %v766_v5  ;;  %v782_v19 = vld [vmem:[#allocation7 + $0x90] ss:$12 sps:$4 sm:$0xff]   ;;  %v795_v20 = vld [vmem:[#allocation7 + $0x68] ss:$12 sps:$4 sm:$0xff]   ;;  %v799_v24 = vld [vmem:[#allocation7 + $0x80] ss:$12 sps:$4 sm:$0xff]  }
  0x51   :  { %260 = vmatprep.subr.bf16.mxu0 %v767_v6  ;;  %706 = vmatpush3.bf16.msra.mxu1 %v785_v12  ;;  %v786_v22 = vld [vmem:[#allocation7 + $0xa8] ss:$12 sps:$4 sm:$0xff]   ;;  %v790_v25 = vld [vmem:[#allocation8 + $0x4] ss:$12 sps:$4 sm:$0xff]   ;;  %v788_v27 = vld [vmem:[#allocation8] ss:$12 sps:$4 sm:$0xff]  }
  0x52   :  { %707 = vmatprep.subr.bf16.mxu1 %v959_v0  ;;  %v803_v28 = vld [vmem:[#allocation7 + $0x98] ss:$12 sps:$4 sm:$0xff]   ;;  %v794_v29 = vld [vmem:[#allocation8 + $0x1c] ss:$12 sps:$4 sm:$0xff]   ;;  %v798_v32 = vld [vmem:[#allocation8 + $0x34] ss:$12 sps:$4 sm:$0xff]  }
  0x53   :  { %v792_v30 = vld [vmem:[#allocation8 + $0x18] ss:$12 sps:$4 sm:$0xff]   ;;  %v807_v31 = vld [vmem:[#allocation7 + $0xb0] ss:$12 sps:$4 sm:$0xff]   ;;  %v814_v34 = vld [vmem:[#allocation8 + $0x8] ss:$12 sps:$4 sm:$0xff]  }
  0x54   :  { %261 = vmatpush1.bf16.msra.mxu0 %v769_v7  ;;  %v796_v33 = vld [vmem:[#allocation8 + $0x30] ss:$12 sps:$4 sm:$0xff]   ;;  %v802_v35 = vld [vmem:[#allocation8 + $0x4c] ss:$12 sps:$4 sm:$0xff]   ;;  %v800_v36 = vld [vmem:[#allocation8 + $0x48] ss:$12 sps:$4 sm:$0xff]  }
  0x55   :  { %262 = vmatprep.subr.bf16.mxu0 %v770_v8  ;;  %708 = vmatpush3.bf16.msra.mxu1 %v787_v14  ;;  %v818_v37 = vld [vmem:[#allocation8 + $0x20] ss:$12 sps:$4 sm:$0xff]   ;;  %v806_v38 = vld [vmem:[#allocation8 + $0x64] ss:$12 sps:$4 sm:$0xff]   ;;  %v810_v41 = vld [vmem:[#allocation8 + $0x7c] ss:$12 sps:$4 sm:$0xff]  }
  0x56   :  { %709 = vmatprep.subr.bf16.mxu1 %v959_v0  ;;  %v804_v39 = vld [vmem:[#allocation8 + $0x60] ss:$12 sps:$4 sm:$0xff]   ;;  %v819_v40 = vld [vmem:[#allocation8 + $0x38] ss:$12 sps:$4 sm:$0xff]   ;;  %v820_v43 = vld [vmem:[#allocation8 + $0x50] ss:$12 sps:$4 sm:$0xff]  }
  0x57   :  { %v808_v42 = vld [vmem:[#allocation8 + $0x78] ss:$12 sps:$4 sm:$0xff]   ;;  %v813_v44 = vld [vmem:[#allocation8 + $0x94] ss:$12 sps:$4 sm:$0xff]   ;;  %v811_v45 = vld [vmem:[#allocation8 + $0x90] ss:$12 sps:$4 sm:$0xff]  }
  0x58   :  { %263 = vmatpush1.bf16.msra.mxu0 %v772_v10  ;;  %v821_v46 = vld [vmem:[#allocation8 + $0x68] ss:$12 sps:$4 sm:$0xff]   ;;  %v817_v47 = vld [vmem:[#allocation8 + $0xac] ss:$12 sps:$4 sm:$0xff]   ;;  %v824_v53 = vld [vmem:[#allocation8 + $0xb0] ss:$12 sps:$4 sm:$0xff]  }
  0x59   :  { %264 = vmatprep.subr.bf16.mxu0 %v773_v11  ;;  %710 = vmatpush3.bf16.msra.mxu1 %v791_v17  ;;  %v815_v48 = vld [vmem:[#allocation8 + $0xa8] ss:$12 sps:$4 sm:$0xff]   ;;  %v1065_v49 = vld [vmem:[#allocation5] sm:$0xff]  ;;  %v822_v50 = vld [vmem:[#allocation8 + $0x80] ss:$12 sps:$4 sm:$0xff]   ;;  %v114_v59 = vshrl.u32 %v113_v58, 7 }
  0x5a   :  { %711 = vmatprep.subr.bf16.mxu1 %v959_v0  ;;  %v337_v51 = vpack.c.bf16 %v1065_v49, %v1065_v49  ;;  %v823_v52 = vld [vmem:[#allocation8 + $0x98] ss:$12 sps:$4 sm:$0xff]   ;;  %v370_v61 = vld [vmem:[%s1096_s5] sm:$0x7] }
  0x5b   :  { %v115_v60 = vsub.s32 0, %v114_v59  ;;  %v111_v62 = vld [vmem:[%s1095_s4] sm:$0x7]  ;;  %v119_v63 = vsub.s32 1, %v114_v59  ;;  %s962_s4 = smov [#allocation10]  }
  0x5c   :  { %265 = vmatpush1.bf16.msra.mxu0 %v775_v13  ;;  %s624_s5 = sshll.u32 %s962_s4, 4  ;;  %s625_s5 = int_to_ptr.vmem [resolvable:$true] %s624_s5 }
  0x5d   :  { %266 = vmatprep.subr.bf16.mxu0 %v776_v15  ;;  %712 = vmatpush3.bf16.msra.mxu1 %v795_v20  ;;  %v120_v2 = vrot.slane %v111_v62, %v119_v63  ;;  %v379_v3 = vrot.slane %v370_v61, %v119_v63  ;;  %v123_v20 = vsub.s32 2, %v114_v59  ;;  %s923_s22 = scalar_lea.vmem %s625_s5, 128  ;;  %p928_p5 = scmp.lt.s32.totalorder %s625_s5, %s625_s5 }
  0x5e   :  { %713 = vmatprep.subr.bf16.mxu1 %v959_v0  ;;  %p924_p4 = scmp.ne.s32.totalorder %s625_s5, %s923_s22  ;;  %p929_p6 = scmp.lt.s32.totalorder %s923_s22, %s923_s22 }
  0x5f   :  { %v745_v6 = vadd.f32 %v379_v3, %v120_v2  ;;  %v124_v23 = vrot.slane %v111_v62, %v123_v20 }
  0x60   :  { %267 = vmatpush1.bf16.msra.mxu0 %v778_v16  ;;  %p930_p7 = por %p929_p6, %p928_p5 }
  0x61   :  { %268 = vmatprep.subr.bf16.mxu0 %v779_v18  ;;  %714 = vmatpush3.bf16.msra.mxu1 %v799_v24 }
  0x62   :  { %715 = vmatprep.subr.bf16.mxu1 %v959_v0  ;;  %p931_p8 = pnand %p930_p7, %p924_p4 }
  0x64   :  { %269 = vmatpush1.bf16.msra.mxu0 %v782_v19 }
  0x65   :  { %270 = vmatprep.subr.bf16.mxu0 %v783_v21  ;;  %716 = vmatpush3.bf16.msra.mxu1 %v803_v28  ;;  %v383_v21 = vrot.slane %v370_v61, %v123_v20 }
  0x66   :  { %717 = vmatprep.subr.bf16.mxu1 %v959_v0 }
  0x68   :  { %271 = vmatpush1.bf16.msra.mxu0 %v786_v22 }
  0x69   :  { %515 = vmatprep.subr.bf16.mxu0 %v790_v25  ;;  %718 = vmatpush3.bf16.msra.mxu1 %v807_v31 }
  0x6a   :  { %723 = vmatprep.subr.bf16.mxu1 %v959_v0 }
  0x6b   :  { %289 = vmatmul.mubr.bf16.vlgmr.msra.gmra.mrb[0].mxu0 %v78_v26 }
  0x6c   :  { %516 = vmatpush1.bf16.msra.mxu0 %v788_v27  ;;  %547 = vmatprep.mubr.bf16.mxu0 %v960_v1  ;;  %v116_v1 = vrot.slane %v111_v62, %v115_v60 }
  0x6d   :  { %517 = vmatprep.subr.bf16.mxu0 %v794_v29  ;;  %720 = vmatmul.mubr.bf16.vlgmr.msra.gmra.mrb[0].mxu1 %v78_v26 }
  0x6e   :  { %724 = vmatpush3.bf16.msra.mxu1 %v814_v34  ;;  %739 = vmatprep.mubr.msk.bf16.mxu1 %vm961_vm0, %v959_v0 }
  0x6f   :  { %725 = vmatprep.subr.bf16.mxu1 %v959_v0 }
  0x70   :  { %518 = vmatpush1.bf16.msra.mxu0 %v792_v30 }
  0x71   :  { %519 = vmatprep.subr.bf16.mxu0 %v798_v32 }
  0x72   :  { %726 = vmatpush3.bf16.msra.mxu1 %v818_v37 }
  0x73   :  { %727 = vmatprep.subr.bf16.mxu1 %v959_v0 }
  0x74   :  { %520 = vmatpush1.bf16.msra.mxu0 %v796_v33 }
  0x75   :  { %521 = vmatprep.subr.bf16.mxu0 %v802_v35 }
  0x76   :  { %728 = vmatpush3.bf16.msra.mxu1 %v819_v40 }
  0x77   :  { %729 = vmatprep.subr.bf16.mxu1 %v959_v0 }
  0x78   :  { %522 = vmatpush1.bf16.msra.mxu0 %v800_v36 }
  0x79   :  { %523 = vmatprep.subr.bf16.mxu0 %v806_v38 }
  0x7a   :  { %730 = vmatpush3.bf16.msra.mxu1 %v820_v43 }
  0x7b   :  { %731 = vmatprep.subr.bf16.mxu1 %v959_v0 }
  0x7c   :  { %524 = vmatpush1.bf16.msra.mxu0 %v804_v39 }
  0x7d   :  { %525 = vmatprep.subr.bf16.mxu0 %v810_v41 }
  0x7e   :  { %732 = vmatpush3.bf16.msra.mxu1 %v821_v46 }
  0x7f   :  { %733 = vmatprep.subr.bf16.mxu1 %v959_v0 }
  0x80   :  { %526 = vmatpush1.bf16.msra.mxu0 %v808_v42 }
  0x81   :  { %527 = vmatprep.subr.bf16.mxu0 %v813_v44 }
  0x82   :  { %734 = vmatpush3.bf16.msra.mxu1 %v822_v50 }
  0x83   :  { %735 = vmatprep.subr.bf16.mxu1 %v959_v0 }
  0x84   :  { %528 = vmatpush1.bf16.msra.mxu0 %v811_v45 }
  0x85   :  { %529 = vmatprep.subr.bf16.mxu0 %v817_v47 }
  0x86   :  { %736 = vmatpush3.bf16.msra.mxu1 %v823_v52 }
  0x87   :  { %737 = vmatprep.subr.bf16.mxu1 %v959_v0  ;;  %v375_v0 = vrot.slane %v370_v61, %v115_v60 }
  0x88   :  { %530 = vmatpush1.bf16.msra.mxu0 %v815_v48 }
  0x89   :  { %v743_v4 = vadd.f32 %v375_v0, %v116_v1 }
  0x8a   :  { %738 = vmatpush3.bf16.msra.mxu1 %v824_v53 }
  0x8b   :  { %548 = vmatmul.mubr.bf16.vlgmr.msra.gmra.mrb[0].mxu0 %v337_v51 }
  0x8d   :  { %740 = vmatmul.mubr.bf16.vlgmr.msra.gmra.mrb[4].mxu1 %v337_v51 }
 0x140   :  { %v331_v54 = vpop.f32.mrb[0].mxu1 }
 0x141   :  { %v721_v55 = vpop.f32.mrb[1].mxu1  ;;  %v332_v27 = vadd.f32 %v331_v54, %v124_v23 }
 0x142   :  { %v334_v56 = vpop.f32.mrb[2].mxu1 }
 0x143   :  { %v722_v57 = vpop.f32.mrb[3].mxu1 }
 0x15e   :  { %v549_v5 = vpop.f32.mrb[0].mxu0 }
 0x15f   :  { %v744_v7 = vadd.f32 %v743_v4, %v549_v5  ;;  %v551_v8 = vpop.f32.mrb[1].mxu0 }
 0x160   :  { %v553_v9 = vpop.f32.mrb[2].mxu0  ;;  %v746_v12 = vadd.f32 %v745_v6, %v551_v8  ;;  %v590_v14 = vpop.f32.mrb[4].mxu1 }
 0x161   :  { %v683_v10 = vmul.f32 -1.442695, %v744_v7  ;;  %v554_v11 = vpop.f32.mrb[3].mxu0  ;;  %v741_v15 = vpop.f32.mrb[5].mxu1  ;;  %v591_v25 = vadd.f32 %v590_v14, %v383_v21 }
 0x162   :  { %v684_v13 = vmul.f32 -1.442695, %v746_v12  ;;  %v593_v16 = vpop.f32.mrb[6].mxu1 }
 0x163   :  { %825 = vpow2.f32 %v683_v10  ;;  %v742_v17 = vpop.f32.mrb[7].mxu1 }
 0x164   :  { %827 = vpow2.f32 %v684_v13 }
 0x16d   :  { %v826_v18 = vpop.eup %825 }
 0x16e   :  { %v600_v19 = vadd.f32 1.0, %v826_v18  ;;  %v828_v22 = vpop.eup %827 }
 0x16f   :  { %v607_v24 = vadd.f32 1.0, %v828_v22 }
 0x170   :  { %829 = vrcp.f32 %v600_v19 }
 0x171   :  { %831 = vrcp.f32 %v607_v24 }
 0x17a   :  { %v830_v26 = vpop.eup %829 }
 0x17b   :  { %v610_v28 = vmul.f32 %v830_v26, %v591_v25  ;;  %v832_v30 = vpop.eup %831 }
 0x17c   :  { %v613_v31 = vsub.f32 1.0, %v832_v30  ;;  %v615_v34 = vmul.f32 %v832_v30, %v1065_v49 }
 0x17d   :  { %v611_v29 = vadd.f32 %v610_v28, %v332_v27 }
 0x17f   :  { %833 = vtanh.f32 %v611_v29 }
 0x189   :  { %v834_v32 = vpop.eup %833 }
 0x18a   :  { %v614_v33 = vmul.f32 %v834_v32, %v613_v31 }
 0x18c   :  { %v616_v35 = vadd.f32 %v615_v34, %v614_v33 }
 0x18e   :  { %617 = vst [vmem:[#allocation10] sm:$0xff] %v616_v35 }
 0x18f   :  { %934 = shalt.err (!%p931_p8)
}
 0x190   :  { %s935_s26 = scalar_lea.hbm %s1097_s6, 128 }
 0x191   :  { %p936_p9 = scmp.ne.s32.totalorder %s1097_s6, %s935_s26  ;;  %p939_p10 = scmp.lt.u32.totalorder %s935_s26, %s1097_s6 }
 0x193   :  { %p941_p11 = pnand %p939_p10, %p936_p9 }
 0x195   :  { %944 = shalt.err (!%p941_p11)
}
 0x196   :  { %627 = dma.vmem_to_hbm [thread:$0]  %s625_s5, 128, %s1097_s6, [#allocation4]  }
 0x197   :  { %951 = dma.done.wait [#allocation4], 128  }
 0x198   :  { %952 = vsyncadd [#allocation4], 4294967168 }
 0x199   :  { %631 = vsyncpa [#allocation3], 1 }
 0x19a   :  { %632 = vsyncpa [#allocation6], 1 }
 0x19b   :  { %633 = vsyncpa [#allocation9], 1 }
 0x19c   :  { %634 = vsyncpa [#allocation4], 1 }

</bundles_post_ra>
